<compile_context>
chip_gen: v7x
topology: tpu7x:2x2x1
jax: 0.10.0
libtpu: 0.0.40
codegen_flags: <defaults>
</compile_context>

<pallas_src>
import functools
import math

import jax
import jax.numpy as jnp
from jax import lax
from jax.experimental import pallas as pl
from jax.experimental.pallas import tpu as pltpu

C_IN = 16
C_OUT = 120
C_OUT_PAD = 128          # pad out-channels to the 128-lane vreg width
KH = KW = 5
K_ROW = KW * C_IN        # 80: contraction length of one kernel-row matmul


def _conv_rowtap_kernel(x_ref, w_ref, b_ref, o_ref, *, img_w, rows80):
    # x_ref: (1, rows_pad, 16)  bf16  flattened NHWC rows (index = h*W + w)
    # w_ref: (5, 80, 128)       bf16  kernel-row-major weights, Cout zero-padded
    # b_ref: (1, 128)           f32   zero-padded bias
    # o_ref: (1, OH*W, 128)     f32   "extended" output rows (garbage cols kept)
    m_ext = o_ref.shape[1]
    x_all = x_ref[0]                                   # (rows_pad, 16) bf16

    # One-time in-VMEM row-im2col: x80[r, j*16+c] = x_all[r + j, c].
    # 5 sublane-shifted views packed along lanes; XLU-only, no extra HBM traffic.
    x80 = jnp.concatenate(
        [x_all[j:j + rows80, :] for j in range(KW)], axis=-1)   # (rows80, 80)

    acc = jnp.zeros((m_ext, o_ref.shape[2]), jnp.float32)
    for i in range(KH):                                 # static unroll, 5 taps
        win = x80[i * img_w:i * img_w + m_ext, :]       # (m_ext, 80) bf16
        acc = acc + jnp.dot(win, w_ref[i],
                            preferred_element_type=jnp.float32)
    o_ref[0] = acc + b_ref[...]


def layer_c5_forward(x, weight, bias):
    """x: (N,16,H,W) f32, weight: (120,16,5,5), bias: (120,) -> (N,120,OH,OW)."""
    N, C, H, W = x.shape
    assert C == C_IN
    OH, OW = H - KH + 1, W - KW + 1
    m_ext = OH * W                                # extended output rows / image
    rows80 = H * W                                # rows of the 80-wide im2col
    rows_need = H * W + KW - 1                    # last row any tap/view touches
    rows_pad = ((rows_need + 7) // 8) * 8         # keep sublane dim 8-aligned

    # Single pass over x: NCHW -> flattened NHWC rows, zero tail pad, bf16.
    x_rows = jnp.transpose(x, (0, 2, 3, 1)).reshape(N, H * W, C_IN)
    x_rows = jnp.pad(x_rows, ((0, 0), (0, rows_pad - H * W), (0, 0)))
    x_rows = x_rows.astype(jnp.bfloat16)

    # Weights: (Cout,Cin,KH,KW) -> (KH, KW*Cin, Cout_pad), zero pad, bf16.
    # w_rows[i, j*16+ci, co] = weight[co, ci, i, j]
    w_rows = jnp.transpose(weight, (2, 3, 1, 0)).reshape(KH, K_ROW, C_OUT)
    w_rows = jnp.pad(w_rows, ((0, 0), (0, 0), (0, C_OUT_PAD - C_OUT)))
    w_rows = w_rows.astype(jnp.bfloat16)
    b_pad = jnp.pad(bias, (0, C_OUT_PAD - C_OUT)).reshape(1, C_OUT_PAD)
    b_pad = b_pad.astype(jnp.float32)

    out_ext = pl.pallas_call(
        functools.partial(_conv_rowtap_kernel, img_w=W, rows80=rows80),
        out_shape=jax.ShapeDtypeStruct((N, m_ext, C_OUT_PAD), jnp.float32),
        grid=(N,),
        in_specs=[
            pl.BlockSpec((1, rows_pad, C_IN), lambda n: (n, 0, 0)),
            pl.BlockSpec((KH, K_ROW, C_OUT_PAD), lambda n: (0, 0, 0)),
            pl.BlockSpec((1, C_OUT_PAD), lambda n: (0, 0)),
        ],
        out_specs=pl.BlockSpec((1, m_ext, C_OUT_PAD), lambda n: (n, 0, 0)),
        compiler_params=pltpu.CompilerParams(
            dimension_semantics=("parallel",)),
    )(x_rows, w_rows, b_pad)

    # (N, OH*W, 128) -> (N, OH, W, 128) -> drop garbage cols / pad chans -> NCHW
    out = out_ext.reshape(N, OH, W, C_OUT_PAD)[:, :, :OW, :C_OUT]
    return jnp.transpose(out, (0, 3, 1, 2))


def init_params(key):
    """Deterministic kaiming_uniform_(a=sqrt(2)) weight, bias = 0.01."""
    fan_in = C_IN * KH * KW
    a = math.sqrt(2.0)
    gain = math.sqrt(2.0 / (1.0 + a * a))
    bound = gain * math.sqrt(3.0 / fan_in)
    weight = jax.random.uniform(
        key, (C_OUT, C_IN, KH, KW), dtype=jnp.float32, minval=-bound, maxval=bound
    )
    bias = jnp.full((C_OUT,), 0.01, dtype=jnp.float32)
    return weight, bias


if __name__ == "__main__":
    key = jax.random.PRNGKey(0)
    k_w, k_x = jax.random.split(key)

    weight, bias = init_params(k_w)
    # Small input consistent with the module: N=2, C=16, H=W=8 -> out (2,120,4,4)
    x = jax.random.normal(k_x, (2, C_IN, 8, 8), dtype=jnp.float32)

    fwd = jax.jit(layer_c5_forward)
    out = fwd(x, weight, bias)
    jax.block_until_ready(out)
    assert out.shape == (2, C_OUT, 4, 4), out.shape

    # Validate the bf16 Pallas path against an f32 XLA conv reference.
    ref = lax.conv_general_dilated(
        x, weight, window_strides=(1, 1), padding="VALID",
        dimension_numbers=("NCHW", "OIHW", "NCHW"),
    ) + bias.reshape(1, C_OUT, 1, 1)
    assert jnp.allclose(out, ref, atol=5e-2, rtol=5e-2), \
        float(jnp.max(jnp.abs(out - ref)))

    print("KERNEL_OK")
</pallas_src>

<mosaic_0001>
module attributes {stable_mosaic.version = 11 : i64} {
  func.func @_conv_rowtap_kernel(%arg0: i32, %arg1: memref<1x72x16xbf16, #tpu.memory_space<vmem>>, %arg2: memref<5x80x128xbf16, #tpu.memory_space<vmem>>, %arg3: memref<1x128xf32, #tpu.memory_space<vmem>>, %arg4: memref<1x32x128xf32, #tpu.memory_space<vmem>>) attributes {dimension_semantics = [#tpu.dimension_semantics<parallel>], iteration_bounds = array<i64: 2>, scalar_prefetch = 0 : i64, scratch_operands = 0 : i64, tpu.core_type = #tpu.core_type<tc>, window_params = [{transform_indices = @transform_0, window_bounds = array<i64: 1, 72, 16>}, {pipeline_mode = #tpu.pipeline_mode<synchronous>, transform_indices = @transform_1, window_bounds = array<i64: 5, 80, 128>}, {pipeline_mode = #tpu.pipeline_mode<synchronous>, transform_indices = @transform_2, window_bounds = array<i64: 1, 128>}, {transform_indices = @transform_3, window_bounds = array<i64: 1, 32, 128>}]} {
    %c0 = arith.constant 0 : index
    %c0_0 = arith.constant 0 : index
    %c0_1 = arith.constant 0 : index
    %0 = vector.load %arg1[%c0, %c0_0, %c0_1] : memref<1x72x16xbf16, #tpu.memory_space<vmem>>, vector<1x72x16xbf16>
    %1 = vector.shape_cast %0 : vector<1x72x16xbf16> to vector<72x16xbf16>
    %2 = vector.extract_strided_slice %1 {offsets = [0, 0], sizes = [64, 16], strides = [1, 1]} : vector<72x16xbf16> to vector<64x16xbf16>
    %3 = vector.extract_strided_slice %1 {offsets = [1, 0], sizes = [64, 16], strides = [1, 1]} : vector<72x16xbf16> to vector<64x16xbf16>
    %4 = vector.extract_strided_slice %1 {offsets = [2, 0], sizes = [64, 16], strides = [1, 1]} : vector<72x16xbf16> to vector<64x16xbf16>
    %5 = vector.extract_strided_slice %1 {offsets = [3, 0], sizes = [64, 16], strides = [1, 1]} : vector<72x16xbf16> to vector<64x16xbf16>
    %6 = vector.extract_strided_slice %1 {offsets = [4, 0], sizes = [64, 16], strides = [1, 1]} : vector<72x16xbf16> to vector<64x16xbf16>
    %7 = tpu.concatenate %2, %3, %4, %5, %6 in 1 : vector<64x16xbf16>, vector<64x16xbf16>, vector<64x16xbf16>, vector<64x16xbf16>, vector<64x16xbf16> -> vector<64x80xbf16>
    %cst = arith.constant 0.000000e+00 : f32
    %8 = vector.broadcast %cst : f32 to vector<32x128xf32>
    %9 = vector.extract_strided_slice %7 {offsets = [0, 0], sizes = [32, 80], strides = [1, 1]} : vector<64x80xbf16> to vector<32x80xbf16>
    %c0_2 = arith.constant 0 : index
    %c0_3 = arith.constant 0 : index
    %c0_4 = arith.constant 0 : index
    %10 = vector.load %arg2[%c0_2, %c0_3, %c0_4] : memref<5x80x128xbf16, #tpu.memory_space<vmem>>, vector<1x80x128xbf16>
    %11 = vector.shape_cast %10 : vector<1x80x128xbf16> to vector<80x128xbf16>
    %cst_5 = arith.constant dense<0.000000e+00> : vector<32x128xf32>
    %12 = tpu.matmul %9, %11, %cst_5 {dimension_numbers = #tpu.dot_dimension_numbers<[1], [0], [0], [1], [0, 0, 1, 1], [], []>} : vector<32x80xbf16>, vector<80x128xbf16>, vector<32x128xf32> -> vector<32x128xf32>
    %13 = arith.addf %8, %12 : vector<32x128xf32>
    %14 = vector.extract_strided_slice %7 {offsets = [8, 0], sizes = [32, 80], strides = [1, 1]} : vector<64x80xbf16> to vector<32x80xbf16>
    %c1 = arith.constant 1 : index
    %c0_6 = arith.constant 0 : index
    %c0_7 = arith.constant 0 : index
    %15 = vector.load %arg2[%c1, %c0_6, %c0_7] : memref<5x80x128xbf16, #tpu.memory_space<vmem>>, vector<1x80x128xbf16>
    %16 = vector.shape_cast %15 : vector<1x80x128xbf16> to vector<80x128xbf16>
    %cst_8 = arith.constant dense<0.000000e+00> : vector<32x128xf32>
    %17 = tpu.matmul %14, %16, %cst_8 {dimension_numbers = #tpu.dot_dimension_numbers<[1], [0], [0], [1], [0, 0, 1, 1], [], []>} : vector<32x80xbf16>, vector<80x128xbf16>, vector<32x128xf32> -> vector<32x128xf32>
    %18 = arith.addf %13, %17 : vector<32x128xf32>
    %19 = vector.extract_strided_slice %7 {offsets = [16, 0], sizes = [32, 80], strides = [1, 1]} : vector<64x80xbf16> to vector<32x80xbf16>
    %c2 = arith.constant 2 : index
    %c0_9 = arith.constant 0 : index
    %c0_10 = arith.constant 0 : index
    %20 = vector.load %arg2[%c2, %c0_9, %c0_10] : memref<5x80x128xbf16, #tpu.memory_space<vmem>>, vector<1x80x128xbf16>
    %21 = vector.shape_cast %20 : vector<1x80x128xbf16> to vector<80x128xbf16>
    %cst_11 = arith.constant dense<0.000000e+00> : vector<32x128xf32>
    %22 = tpu.matmul %19, %21, %cst_11 {dimension_numbers = #tpu.dot_dimension_numbers<[1], [0], [0], [1], [0, 0, 1, 1], [], []>} : vector<32x80xbf16>, vector<80x128xbf16>, vector<32x128xf32> -> vector<32x128xf32>
    %23 = arith.addf %18, %22 : vector<32x128xf32>
    %24 = vector.extract_strided_slice %7 {offsets = [24, 0], sizes = [32, 80], strides = [1, 1]} : vector<64x80xbf16> to vector<32x80xbf16>
    %c3 = arith.constant 3 : index
    %c0_12 = arith.constant 0 : index
    %c0_13 = arith.constant 0 : index
    %25 = vector.load %arg2[%c3, %c0_12, %c0_13] : memref<5x80x128xbf16, #tpu.memory_space<vmem>>, vector<1x80x128xbf16>
    %26 = vector.shape_cast %25 : vector<1x80x128xbf16> to vector<80x128xbf16>
    %cst_14 = arith.constant dense<0.000000e+00> : vector<32x128xf32>
    %27 = tpu.matmul %24, %26, %cst_14 {dimension_numbers = #tpu.dot_dimension_numbers<[1], [0], [0], [1], [0, 0, 1, 1], [], []>} : vector<32x80xbf16>, vector<80x128xbf16>, vector<32x128xf32> -> vector<32x128xf32>
    %28 = arith.addf %23, %27 : vector<32x128xf32>
    %29 = vector.extract_strided_slice %7 {offsets = [32, 0], sizes = [32, 80], strides = [1, 1]} : vector<64x80xbf16> to vector<32x80xbf16>
    %c4 = arith.constant 4 : index
    %c0_15 = arith.constant 0 : index
    %c0_16 = arith.constant 0 : index
    %30 = vector.load %arg2[%c4, %c0_15, %c0_16] : memref<5x80x128xbf16, #tpu.memory_space<vmem>>, vector<1x80x128xbf16>
    %31 = vector.shape_cast %30 : vector<1x80x128xbf16> to vector<80x128xbf16>
    %cst_17 = arith.constant dense<0.000000e+00> : vector<32x128xf32>
    %32 = tpu.matmul %29, %31, %cst_17 {dimension_numbers = #tpu.dot_dimension_numbers<[1], [0], [0], [1], [0, 0, 1, 1], [], []>} : vector<32x80xbf16>, vector<80x128xbf16>, vector<32x128xf32> -> vector<32x128xf32>
    %33 = arith.addf %28, %32 : vector<32x128xf32>
    %c0_18 = arith.constant 0 : index
    %c0_19 = arith.constant 0 : index
    %34 = vector.load %arg3[%c0_18, %c0_19] : memref<1x128xf32, #tpu.memory_space<vmem>>, vector<1x128xf32>
    %35 = vector.broadcast %34 : vector<1x128xf32> to vector<32x128xf32>
    %36 = arith.addf %33, %35 : vector<32x128xf32>
    %c0_20 = arith.constant 0 : index
    %c0_21 = arith.constant 0 : index
    %c0_22 = arith.constant 0 : index
    %37 = vector.load %arg4[%c0_20, %c0_21, %c0_22] : memref<1x32x128xf32, #tpu.memory_space<vmem>>, vector<1x32x128xf32>
    %38 = vector.shape_cast %37 : vector<1x32x128xf32> to vector<32x128xf32>
    %39 = vector.shape_cast %36 : vector<32x128xf32> to vector<1x32x128xf32>
    tpu.vector_store %arg4[%c0_20, %c0_21, %c0_22], %39 {strides = array<i32>} : memref<1x32x128xf32, #tpu.memory_space<vmem>>, vector<1x32x128xf32>,
    return
  }
  func.func @transform_0(%arg0: i32) -> (i32, i32, i32) {
    %c0_i32 = arith.constant 0 : i32
    %c0_i32_0 = arith.constant 0 : i32
    %c0_i32_1 = arith.constant 0 : i32
    return %arg0, %c0_i32, %c0_i32_0 : i32, i32, i32
  }
  func.func @transform_1(%arg0: i32) -> (i32, i32, i32) {
    %c0_i32 = arith.constant 0 : i32
    %c0_i32_0 = arith.constant 0 : i32
    %c0_i32_1 = arith.constant 0 : i32
    %c0_i32_2 = arith.constant 0 : i32
    return %c0_i32, %c0_i32_0, %c0_i32_1 : i32, i32, i32
  }
  func.func @transform_2(%arg0: i32) -> (i32, i32) {
    %c0_i32 = arith.constant 0 : i32
    %c0_i32_0 = arith.constant 0 : i32
    %c0_i32_1 = arith.constant 0 : i32
    return %c0_i32, %c0_i32_0 : i32, i32
  }
  func.func @transform_3(%arg0: i32) -> (i32, i32, i32) {
    %c0_i32 = arith.constant 0 : i32
    %c0_i32_0 = arith.constant 0 : i32
    %c0_i32_1 = arith.constant 0 : i32
    return %arg0, %c0_i32, %c0_i32_0 : i32, i32, i32
  }
}

</mosaic_0001>

<bundles_post_ra>
// kernel: layer_c5_forward.1
= control target key start
LH: loop header
LB: loop body
LE: loop exit
PB: predicated region body
PF: predicated region fallthrough
CT: control target
= control target key end

     0   :  { %s1200_s12 = smov 0   ;;  %s1426_s0 = inlined_call_operand.vmem [shape: bf16[2,72,16], index: 0, kind: input, shape index: {}]   ;;  %s1427_s1 = inlined_call_operand.vmem [shape: bf16[5,80,128], index: 1, kind: input, shape index: {}]   ;;  %s1428_s2 = inlined_call_operand.vmem [shape: f32[1,128], index: 2, kind: input, shape index: {}]   ;;  %s1429_s3 = inlined_call_operand.vmem [shape: f32[2,32,128], index: 3, kind: output, shape index: {}]  }
   0x1 LB: > { %s912_s13 = sadd.s32 4294967295, %s1174_s12   ;;  %p916_p0 = scmp.ge.s32.totalorder %s1174_s12, 1  ;;  %s1174_s12 = sphi %s1200_s12, %s13_s12  }
   0x2   : > { %p137_p1 = scmp.lt.s32.totalorder %s1174_s12, 3 }
   0x4   : > { %p138_p2 = pnand %p916_p0, %p137_p1 }
   0x5   : > { %p161_p3 = scmp.lt.s32.totalorder (!%p138_p2), %s912_s13, 1  ;;  %v1143_v0 = vld [vmem:[%s1427_s1 + $0x50] sm:$0xff] (!%p138_p2)   ;;  %vm249_vm0 = vcmask (!%p138_p2), 1046528   ;;  %v1144_v1 = vld [vmem:[%s1427_s1 + $0x58] sm:$0xff] (!%p138_p2)   ;;  %v1145_v2 = vld [vmem:[%s1427_s1 + $0x60] sm:$0xff] (!%p138_p2)   ;;  %s1176_s24 = smov (!%p138_p2), 32  }
   0x6   : > { %141 = sbr.rel (%p138_p2) target bundleno = 414 (0x19e), region = 32  ;;  %1067 = vmatprep.subr.bf16.mxu0 (!%p138_p2), %v1143_v0  ;;  %vm204_vm1 = vsmask.f32 (!%p138_p2), 7424  ;;  %vm267_vm2 = vsmask.f32 (!%p138_p2), 6400  ;;  %v1146_v22 = vld [vmem:[%s1427_s1 + $0x68] sm:$0xff] (!%p138_p2)  }
   0x7   : > { %1068 = vmatpush3.bf16.msra.mxu0 (!%p138_p2), %v1143_v0  ;;  %v1148_v28 = vld [vmem:[%s1427_s1 + $0x28] sm:$0xff] (!%p138_p2)   ;;  %v1147_v32 = vld [vmem:[%s1427_s1 + $0x70] sm:$0xff] (!%p138_p2)   ;;  %vm297_vm3 = vcmask (!%p138_p2), 1045504   ;;  %s1177_s4 = smov (!%p138_p2), 16   ;;  %v1280_v43 = vld [vmem:[%s1427_s1 + $0x78] sm:$0xff] (!%p138_p2)   ;;  %s1178_s9 = smov (!%p138_p2), 48  }
   0x8   : > { %1069 = vmatprep.subr.bf16.mxu0 (!%p138_p2), %v1144_v1  ;;  %1039 = vmatprep.subr.bf16.mxu1 (!%p138_p2), %v1148_v28  ;;  %v1150_v44 = vld [vmem:[%s1427_s1 + $0x30] sm:$0xff] (!%p138_p2)   ;;  %v1152_v53 = vld [vmem:[%s1427_s1 + $0x38] sm:$0xff] (!%p138_p2)   ;;  %s1179_s14 = smov (!%p138_p2), 64   ;;  %v1154_v60 = vld [vmem:[%s1427_s1 + $0x40] sm:$0xff] (!%p138_p2)   ;;  %vm315_vm4 = vcmask (!%p138_p2), 130048   ;;  %vm324_vm5 = vcmask (!%p138_p2), 261120  }
   0x9   : > { %1040 = vmatpush3.bf16.msra.mxu1 (!%p138_p2), %v1148_v28  ;;  %vm333_vm6 = vcmask (!%p138_p2), 392192   ;;  %vm342_vm7 = vcmask (!%p138_p2), 523264   ;;  %vm411_vm8 = vcmask (!%p138_p2), 654336   ;;  %vm375_vm9 = vcmask (!%p138_p2), 1043456  }
   0xa   : > { %1041 = vmatprep.subr.bf16.mxu1 (!%p138_p2), %v1150_v44 }
   0xb   : > { %1070 = vmatpush3.bf16.msra.mxu0 (!%p138_p2), %v1144_v1 }
   0xc   : > { %1071 = vmatprep.subr.bf16.mxu0 (!%p138_p2), %v1145_v2 }
   0xd   : > { %s1431_s13 = smov (!%p161_p3, %s912_s13), 1  ;;  %1042 = vmatpush3.bf16.msra.mxu1 %v1150_v44 }
   0xe   : > { %s1125_s18 = smul.u32 36, %s1431_s13  ;;  %1043 = vmatprep.subr.bf16.mxu1 %v1152_v53  ;;  %s1003_s22 = sshll.u32 %s1431_s13, 5 }
   0xf   : > { %1072 = vmatpush3.bf16.msra.mxu0 %v1145_v2  ;;  %s170_s27 = scalar_lea.vmem %s1429_s3, %s1003_s22 }
  0x10   : > { %s1223_s23 = scalar_lea.vmem %s1426_s0, %s1125_s18  ;;  %1073 = vmatprep.subr.bf16.mxu0 %v1146_v22 }
  0x11   : > { %v1226_v3 = vld [vmem:[%s1223_s23 + $0x8] sm:$0xff]   ;;  %v1229_v4 = vld [vmem:[%s1223_s23 + $0x10] sm:$0xff]   ;;  %v1232_v5 = vld [vmem:[%s1223_s23 + $0x18] sm:$0xff]   ;;  %1044 = vmatpush3.bf16.msra.mxu1 %v1152_v53 }
  0x12   : > { %v251_v6 = vrot.slane %v1226_v3, 1  ;;  %v253_v7 = vrot.slane %v1229_v4, 1  ;;  %v213_v8 = vshll.u32 %v1226_v3, 16  ;;  %v217_v9 = vshrl.u32 %v1226_v3, 16  ;;  %v1249_v17 = vld [vmem:[%s1223_s23 + $0x20] ss:$0 sps:$4 sm:$0xff]   ;;  %1045 = vmatprep.subr.bf16.mxu1 %v1154_v60 }
  0x13   : > { %v255_v10 = vrot.slane %v1232_v5, 1  ;;  %v221_v11 = vshll.u32 %v1229_v4, 16  ;;  %v225_v12 = vshrl.u32 %v1229_v4, 16  ;;  %v229_v13 = vshll.u32 %v1232_v5, 16  ;;  %v1260_v27 = vld [vmem:[%s1223_s23] sm:$0xff]   ;;  %1074 = vmatpush3.bf16.msra.mxu0 %v1146_v22 }
  0x14   : > { %v254_v14 = vsel %vm249_vm0, %v251_v6, %v253_v7  ;;  %v1245_v15 = vrot.slane %v213_v8, 1  ;;  %v233_v16 = vshrl.u32 %v1232_v5, 16  ;;  %v271_v31 = vrot.slane %v217_v9, 1  ;;  %1075 = vmatprep.subr.bf16.mxu0 %v1147_v32  ;;  %v1159_v53 = vld [vmem:[%s1427_s1 + $0xa0] sm:$0xff]  }
  0x15   : > { %261 = vrot.lane.b32.xlu1 %v254_v14, %s1176_s24  ;;  %v256_v18 = vsel %vm249_vm0, %v253_v7, %v255_v10  ;;  %v223_v19 = vrot.slane %v221_v11, 1  ;;  %v275_v20 = vrot.slane %v225_v12, 1  ;;  %v276_v21 = vrot.slane %v221_v11, 2  ;;  %1046 = vmatpush3.bf16.msra.mxu1 %v1154_v60  ;;  %v1156_v7 = vld [vmem:[%s1427_s1 + $0x48] sm:$0xff]   ;;  %v1163_v60 = vld [vmem:[%s1427_s1 + $0xb0] sm:$0xff]  }
  0x16   : > { %v219_v23 = vor.u32 %v217_v9, %v1245_v15  ;;  %v279_v24 = vrot.slane %v233_v16, 1  ;;  %v280_v25 = vrot.slane %v229_v13, 2  ;;  %v231_v26 = vrot.slane %v229_v13, 1  ;;  %1047 = vmatprep.subr.bf16.mxu1 %v1156_v7 }
  0x17   : > { %v277_v29 = vor.u32 %v276_v21, %v275_v20  ;;  %v227_v30 = vor.u32 %v225_v12, %v223_v19  ;;  %v272_v35 = vrot.slane %v213_v8, 2  ;;  %v301_v36 = vrot.slane %v1229_v4, 2  ;;  %1076 = vmatpush3.bf16.msra.mxu0 %v1147_v32  ;;  %v1325_v12 = vld [vmem:[%s1427_s1] sm:$0xff]  }
  0x18   : > { %v224_v33 = vsel %vm204_vm1, %v219_v23, %v223_v19  ;;  %v281_v34 = vor.u32 %v280_v25, %v279_v24  ;;  %v303_v37 = vrot.slane %v1232_v5, 2  ;;  %v237_v41 = vshll.u32 %v1249_v17, 16  ;;  %1081 = vmatprep.subr.bf16.mxu0 %v1280_v43 }
  0x19   : > { %263 = vrot.lane.b32.xlu1 %v256_v18, %s1176_s24  ;;  %243 = vrot.lane.b32.xlu0 %v224_v33, %s1177_s4  ;;  %v232_v39 = vsel %vm204_vm1, %v227_v30, %v231_v26  ;;  %v273_v40 = vor.u32 %v272_v35, %v271_v31  ;;  %v208_v42 = vshll.u32 %v1260_v27, 16  ;;  %v235_v46 = vor.u32 %v233_v16, %v231_v26 }
  0x1a   : > { %v282_v38 = vsel %vm267_vm2, %v277_v29, %v281_v34  ;;  %v304_v45 = vsel %vm297_vm3, %v301_v36, %v303_v37  ;;  %v299_v47 = vrot.slane %v1226_v3, 2  ;;  %v283_v48 = vshrl.u32 %v1249_v17, 16  ;;  %1048 = vmatpush3.bf16.msra.mxu1 %v1156_v7 }
  0x1b   : > { %v278_v49 = vsel %vm267_vm2, %v273_v40, %v277_v29  ;;  %v239_v50 = vrot.slane %v237_v41, 1  ;;  %v206_v51 = vshrl.u32 %v1260_v27, 16  ;;  %v210_v52 = vrot.slane %v208_v42, 1  ;;  %1053 = vmatprep.subr.bf16.mxu1 %v1325_v12 }
  0x1c   : > { %v257_v54 = vrot.slane %v1249_v17, 1  ;;  %v285_v55 = vrot.slane %v283_v48, 1  ;;  %v286_v56 = vrot.slane %v237_v41, 2  ;;  %v302_v58 = vsel %vm297_vm3, %v299_v47, %v301_v36 }
  0x1d   : > { %293 = vrot.lane.b32.xlu1 %v282_v38, %s1178_s9  ;;  %245 = vrot.lane.b32.xlu0 %v232_v39, %s1177_s4  ;;  %v240_v57 = vsel %vm204_vm1, %v235_v46, %v239_v50  ;;  %v211_v59 = vor.u32 %v210_v52, %v206_v51  ;;  %v250_v61 = vrot.slane %v1260_v27, 1  ;;  %v268_v62 = vrot.slane %v206_v51, 1  ;;  %v1153_v38 = vld [vmem:[%s1427_s1 + $0x88] sm:$0xff]   ;;  %v1157_v46 = vld [vmem:[%s1427_s1 + $0x98] sm:$0xff]  }
  0x1e   : > { %v269_v63 = vrot.slane %v208_v42, 2  ;;  %v258_v0 = vsel %vm249_vm0, %v255_v10, %v257_v54  ;;  %v287_v2 = vor.u32 %v286_v56, %v285_v55  ;;  %v305_v8 = vrot.slane %v1249_v17, 2  ;;  %v1155_v42 = vld [vmem:[%s1427_s1 + $0x90] sm:$0xff]   ;;  %v1160_v56 = vld [vmem:[%s1427_s1 + $0x8] sm:$0xff]  }
  0x1f   : > { %v216_v1 = vsel %vm204_vm1, %v211_v59, %v1245_v15  ;;  %v252_v10 = vsel %vm249_vm0, %v250_v61, %v251_v6  ;;  %v298_v15 = vrot.slane %v1260_v27, 2  ;;  %v1162_v59 = vld [vmem:[%s1427_s1 + $0x10] sm:$0xff]   ;;  %v1164_v61 = vld [vmem:[%s1427_s1 + $0x18] sm:$0xff]  }
  0x20   : > { %v288_v9 = vsel %vm267_vm2, %v281_v34, %v287_v2  ;;  %v270_v11 = vor.u32 %v269_v63, %v268_v62  ;;  %v306_v13 = vsel %vm297_vm3, %v303_v37, %v305_v8  ;;  %v1165_v62 = vld [vmem:[%s1427_s1 + $0xb8] sm:$0xff]   ;;  %v1166_v63 = vld [vmem:[%s1427_s1 + $0x20] sm:$0xff]  }
  0x21   : > { %311 = vrot.lane.b32.xlu1 %v304_v45, %s1179_s14  ;;  %291 = vrot.lane.b32.xlu0 %v278_v49, %s1178_s9  ;;  %v300_v6 = vsel %vm297_vm3, %v298_v15, %v299_v47  ;;  %v1000_v8 = vld [vmem:[%s1428_s2] ss:$0 sm:$0xff] }
  0x22   : > { %v274_v14 = vsel %vm267_vm2, %v270_v11, %v273_v40 }
  0x25   : > { %247 = vrot.lane.b32.xlu1 %v240_v57, %s1177_s4  ;;  %309 = vrot.lane.b32.xlu0 %v302_v58, %s1179_s14  ;;  %v1161_v58 = vld [vmem:[%s1427_s1 + $0xa8] sm:$0xff]  }
  0x29   : > { %265 = vrot.lane.b32.xlu1 %v258_v0, %s1176_s24  ;;  %241 = vrot.lane.b32.xlu0 %v216_v1, %s1177_s4  ;;  %v1167_v0 = vld [vmem:[%s1427_s1 + $0xc0] sm:$0xff]  }
  0x2d   : > { %295 = vrot.lane.b32.xlu1 %v288_v9, %s1178_s9  ;;  %259 = vrot.lane.b32.xlu0 %v252_v10, %s1176_s24 }
  0x31   : > { %313 = vrot.lane.b32.xlu1 %v306_v13, %s1179_s14  ;;  %289 = vrot.lane.b32.xlu0 %v274_v14, %s1178_s9 }
  0x35   : > { %307 = vrot.lane.b32.xlu0 %v300_v6, %s1179_s14 }
  0x87   : > { %v262_v16 = vpop.permute.xlu1 %261 }
  0x8b   : > { %v264_v17 = vpop.permute.xlu1 %263  ;;  %v244_v18 = vpop.permute.xlu0 %243 }
  0x8c   : > { %v319_v23 = vsel %vm315_vm4, %v1226_v3, %v244_v18  ;;  %v1151_v3 = vld [vmem:[%s1427_s1 + $0x80] sm:$0xff]  }
  0x8d   : > { %v328_v29 = vsel %vm324_vm5, %v319_v23, %v262_v16 }
  0x8f   : > { %v294_v19 = vpop.permute.xlu1 %293  ;;  %v246_v20 = vpop.permute.xlu0 %245 }
  0x90   : > { %v321_v21 = vsel %vm315_vm4, %v1229_v4, %v246_v20 }
  0x91   : > { %v330_v22 = vsel %vm324_vm5, %v321_v21, %v264_v17 }
  0x92   : > { %v339_v25 = vsel %vm333_vm6, %v330_v22, %v294_v19 }
  0x93   : > { %v312_v24 = vpop.permute.xlu1 %311  ;;  %v292_v26 = vpop.permute.xlu0 %291 }
  0x94   : > { %v348_v28 = vsel %vm342_vm7, %v339_v25, %v312_v24  ;;  %v337_v30 = vsel %vm333_vm6, %v328_v29, %v292_v26 }
  0x95   : > { %v379_v33 = vrot.slane %v348_v28, 4 }
  0x97   : > { %v248_v31 = vpop.permute.xlu1 %247  ;;  %v310_v4 = vpop.permute.xlu0 %309 }
  0x98   : > { %v1347_v32 = vsel %vm342_vm7, %v337_v30, %v310_v4  ;;  %v323_v39 = vsel %vm315_vm4, %v1232_v5, %v248_v31 }
  0x99   : > { %v377_v34 = vrot.slane %v1347_v32, 4  ;;  %1077 = vmatprep.mubr.msk.bf16.mxu0 %vm411_vm8, %v1347_v32 }
  0x9a   : > { %1078 = vmatmul.mubr.msk.bf16.vlgmr.msra.gmra.mrb[0].mxu0 %vm411_vm8, %v348_v28 }
  0x9b   : > { %1082 = vmatpush3.bf16.msra.mxu0 %v1280_v43  ;;  %v266_v35 = vpop.permute.xlu1 %265  ;;  %v242_v36 = vpop.permute.xlu0 %241  ;;  %v380_v37 = vsel %vm375_vm9, %v377_v34, %v379_v33 }
  0x9c   : > { %1091 = vmatprep.mubr.msk.bf16.mxu0 %vm411_vm8, %v380_v37  ;;  %1083 = vmatprep.subr.bf16.mxu0 %v1151_v3  ;;  %v332_v43 = vsel %vm324_vm5, %v323_v39, %v266_v35  ;;  %v317_v5 = vsel %vm315_vm4, %v1260_v27, %v242_v36 }
  0x9f   : > { %1084 = vmatpush3.bf16.msra.mxu0 %v1151_v3  ;;  %v296_v40 = vpop.permute.xlu1 %295  ;;  %v260_v41 = vpop.permute.xlu0 %259 }
  0xa0   : > { %1085 = vmatprep.subr.bf16.mxu0 %v1153_v38  ;;  %v341_v47 = vsel %vm333_vm6, %v332_v43, %v296_v40  ;;  %v326_v48 = vsel %vm324_vm5, %v317_v5, %v260_v41 }
  0xa3   : > { %1086 = vmatpush3.bf16.msra.mxu0 %v1153_v38  ;;  %v314_v44 = vpop.permute.xlu1 %313  ;;  %v290_v45 = vpop.permute.xlu0 %289 }
  0xa4   : > { %1087 = vmatprep.subr.bf16.mxu0 %v1155_v42  ;;  %v350_v49 = vsel %vm342_vm7, %v341_v47, %v314_v44  ;;  %v335_v50 = vsel %vm333_vm6, %v326_v48, %v290_v45 }
  0xa5   : > { %v658_v54 = vrot.slane %v350_v49, 4 }
  0xa7   : > { %1088 = vmatpush3.bf16.msra.mxu0 %v1155_v42  ;;  %v308_v51 = vpop.permute.xlu0 %307  ;;  %v659_v57 = vsel %vm375_vm9, %v379_v33, %v658_v54 }
  0xa8   : > { %v344_v52 = vsel %vm342_vm7, %v335_v50, %v308_v51  ;;  %1089 = vmatprep.subr.bf16.mxu0 %v1157_v46 }
  0xa9   : > { %v376_v55 = vrot.slane %v344_v52, 4 }
  0xab   : > { %1090 = vmatpush3.bf16.msra.mxu0 %v1157_v46  ;;  %v378_v27 = vsel %vm375_vm9, %v376_v55, %v377_v34 }
  0xac   : > { %1049 = vmatprep.mubr.msk.bf16.mxu1 %vm411_vm8, %v378_v27  ;;  %1095 = vmatprep.subr.bf16.mxu0 %v1159_v53 }
  0xad   : > { %1050 = vmatmul.mubr.msk.bf16.vlgmr.msra.gmra.mrb[0].mxu1 %vm411_vm8, %v380_v37 }
  0xae   : > { %1054 = vmatpush3.bf16.msra.mxu1 %v1325_v12  ;;  %1092 = vmatmul.mubr.msk.bf16.vlgmr.msra.gmra.mrb[0].mxu0 %vm411_vm8, %v659_v57 }
  0xaf   : > { %1063 = vmatprep.mubr.msk.bf16.mxu1 %vm411_vm8, %v344_v52  ;;  %1096 = vmatpush3.bf16.msra.mxu0 %v1159_v53 }
  0xb0   : > { %1105 = vmatprep.mubr.msk.bf16.mxu0 %vm411_vm8, %v348_v28  ;;  %1055 = vmatprep.subr.bf16.mxu1 %v1160_v56 }
  0xb1   : > { %1097 = vmatprep.subr.bf16.mxu0 %v1161_v58 }
  0xb2   : > { %1056 = vmatpush3.bf16.msra.mxu1 %v1160_v56 }
  0xb3   : > { %1098 = vmatpush3.bf16.msra.mxu0 %v1161_v58  ;;  %1057 = vmatprep.subr.bf16.mxu1 %v1162_v59 }
  0xb4   : > { %1099 = vmatprep.subr.bf16.mxu0 %v1163_v60 }
  0xb6   : > { %1058 = vmatpush3.bf16.msra.mxu1 %v1162_v59 }
  0xb7   : > { %1100 = vmatpush3.bf16.msra.mxu0 %v1163_v60  ;;  %1059 = vmatprep.subr.bf16.mxu1 %v1164_v61 }
  0xb8   : > { %1101 = vmatprep.subr.bf16.mxu0 %v1165_v62 }
  0xba   : > { %1060 = vmatpush3.bf16.msra.mxu1 %v1164_v61 }
  0xbb   : > { %1102 = vmatpush3.bf16.msra.mxu0 %v1165_v62  ;;  %1061 = vmatprep.subr.bf16.mxu1 %v1166_v63 }
  0xbc   : > { %1103 = vmatprep.subr.bf16.mxu0 %v1167_v0 }
  0xbe   : > { %1062 = vmatpush3.bf16.msra.mxu1 %v1166_v63 }
  0xbf   : > { %1104 = vmatpush3.bf16.msra.mxu0 %v1167_v0 }
  0xc1   : > { %1064 = vmatmul.mubr.msk.bf16.vlgmr.msra.gmra.mrb[0].mxu1 %vm411_vm8, %v1347_v32 }
  0xc2   : > { %1106 = vmatmul.mubr.msk.bf16.vlgmr.msra.gmra.mrb[0].mxu0 %vm411_vm8, %v350_v49 }
 0x194   : > { %v1065_v1 = vpop.f32.mrb[0].mxu1 }
 0x195   : > { %v535_v2 = vpop.f32.mrb[1].mxu1  ;;  %v1107_v7 = vpop.f32.mrb[0].mxu0 }
 0x196   : > { %v1109_v9 = vadd.f32 %v1107_v7, %v1065_v1  ;;  %v1066_v10 = vpop.f32.mrb[2].mxu1  ;;  %v823_v11 = vpop.f32.mrb[1].mxu0 }
 0x197   : > { %v1110_v12 = vadd.f32 %v823_v11, %v535_v2  ;;  %v538_v13 = vpop.f32.mrb[3].mxu1  ;;  %v1108_v14 = vpop.f32.mrb[2].mxu0 }
 0x198   : > { %v851_v15 = vadd.f32 %v1109_v9, %v1000_v8  ;;  %v1111_v6 = vadd.f32 %v1108_v14, %v1066_v10  ;;  %v826_v16 = vpop.f32.mrb[3].mxu0 }
 0x199   : > { %v849_v17 = vadd.f32 %v1110_v12, %v1000_v8  ;;  %v1112_v18 = vadd.f32 %v826_v16, %v538_v13 }
 0x19a   : > { %855 = vst [vmem:[%s170_s27 + $0x10] sm:$0xff] %v851_v15  ;;  %v852_v19 = vadd.f32 %v1111_v6, %v1000_v8 }
 0x19b   : > { %853 = vst [vmem:[%s170_s27] sm:$0xff] %v849_v17  ;;  %v850_v20 = vadd.f32 %v1112_v18, %v1000_v8 }
 0x19c   : > { %856 = vst [vmem:[%s170_s27 + $0x18] sm:$0xff] %v852_v19 }
 0x19d   : > { %854 = vst [vmem:[%s170_s27 + $0x8] sm:$0xff] %v850_v20 }
 0x19e PF: > { %s13_s12 = sadd.s32 1, %s1174_s12  }
 0x19f   : > { %p10_p4 = scmp.ge.s32.totalorder %s13_s12, 4  }
 0x1a1   :  { %12 = sbr.rel (!%p10_p4) target bundleno = 1 (0x1), region = 66 }

</bundles_post_ra>
